<compile_context>
chip_gen: v5e
topology: v5e:2x2
jax: 0.10.0
libtpu: 0.0.40
codegen_flags: <defaults>
</compile_context>

<pallas_src>
import functools

import jax
import jax.numpy as jnp
from jax.experimental import pallas as pl
from jax.experimental.pallas import tpu as pltpu


# --------------------------------------------------------------------------- #
# Kernel
# --------------------------------------------------------------------------- #
def _rmsnorm_kernel(x_ref, w_ref, o_ref, *, eps: float):
    # x_ref: (tile_rows, dim)   w_ref: (1, dim)   o_ref: (tile_rows, dim)
    x = x_ref[...].astype(jnp.float32)              # x.float()
    w = w_ref[...].astype(jnp.float32)              # loop-invariant, tiny (1, dim)
    ms = jnp.mean(x * x, axis=-1, keepdims=True)    # pow(2).mean(-1, keepdim=True)
    inv = jax.lax.rsqrt(ms + eps)                   # rsqrt(... + eps)
    # Single downcast: weight applied while still in the f32 path.
    o_ref[...] = (x * inv * w).astype(o_ref.dtype)


# --------------------------------------------------------------------------- #
# Tile-size / VMEM heuristics
# --------------------------------------------------------------------------- #
def _round_up(x: int, m: int) -> int:
    return -(-x // m) * m


def _sublane_pack(dtype) -> int:
    # Rows per packed vreg sublane group: f32 -> 8, bf16 -> 16, int8/fp8 -> 32.
    return max(8, 32 // max(jnp.dtype(dtype).itemsize, 1))


def _vmem_capacity_bytes() -> int:
    try:
        info = pltpu.get_tpu_info()
        cap = getattr(info, "vmem_capacity_bytes", None)
        if cap:
            return int(cap)
    except Exception:
        pass
    # Conservative fallback = v7x (smallest per-TensorCore VMEM).
    return 64 * 1024 * 1024


def _pick_tile_rows(rows: int, dim: int, dtype) -> int:
    pack = _sublane_pack(dtype)
    itemsize = jnp.dtype(dtype).itemsize
    # ~60% of physical VMEM for pipeline buffers + kernel temporaries.
    budget = int(_vmem_capacity_bytes() * 0.6)
    # Per row: double-buffered input + output (native dtype) and roughly three
    # live f32 temporaries inside the kernel body.
    per_row = dim * (4 * itemsize + 3 * 4)
    fit = max(pack, (budget // max(per_row, 1)) // pack * pack)
    tile = min(1024, fit)
    rows_padded = _round_up(rows, pack)
    tile = min(tile, rows_padded)
    # Keep >= 2 grid steps when possible so v7x can split the parallel row axis
    # across its two TensorCores (costs nothing on v5e/v6e).
    if rows_padded >= 2 * pack:
        tile = min(tile, _round_up((rows + 1) // 2, pack))
    return max(pack, tile)


def _vmem_limit_bytes(tile_rows: int, dim: int, x_dtype, out_dtype) -> int:
    in_b = jnp.dtype(x_dtype).itemsize
    out_b = jnp.dtype(out_dtype).itemsize
    need = 2 * tile_rows * dim * (in_b + out_b)     # double-buffered in + out
    need += 2 * dim * 4                             # weight block
    need += 4 * tile_rows * dim * 4                 # f32 temporaries headroom
    cap = int(_vmem_capacity_bytes() * 0.9)
    return min(max(need + (4 << 20), 32 << 20), cap)


# --------------------------------------------------------------------------- #
# Wrapper
# --------------------------------------------------------------------------- #
def rmsnorm(x: jax.Array, weight: jax.Array, eps: float = 1e-6,
            tile_rows=None, donate_input: bool = False) -> jax.Array:
    """RMSNorm over the last axis of `x`, scaled by `weight` (shape [dim])."""
    orig_shape = x.shape
    dim = orig_shape[-1]
    if weight.shape != (dim,):
        raise ValueError(f"weight must have shape ({dim},), got {weight.shape}")
    if dim % 128 != 0:
        # Lane-dense stores need dim % 128 == 0; pad the model dim at build
        # time rather than silently eating masked vst.msk partial stores here.
        raise ValueError(f"dim must be a multiple of 128, got {dim}")

    rows = 1
    for s in orig_shape[:-1]:
        rows *= s
    x2d = x.reshape(rows, dim)          # free for a contiguous [..., dim] input
    w2d = weight.reshape(1, dim)

    if tile_rows is None:
        tile_rows = _pick_tile_rows(rows, dim, x.dtype)
    pack = _sublane_pack(x.dtype)
    assert tile_rows % pack == 0, (tile_rows, pack)

    grid = (pl.cdiv(rows, tile_rows),)

    out2d = pl.pallas_call(
        functools.partial(_rmsnorm_kernel, eps=eps),
        out_shape=jax.ShapeDtypeStruct((rows, dim), x.dtype),
        grid=grid,
        in_specs=[
            pl.BlockSpec((tile_rows, dim), lambda i: (i, 0)),
            pl.BlockSpec((1, dim), lambda i: (0, 0)),
        ],
        out_specs=pl.BlockSpec((tile_rows, dim), lambda i: (i, 0)),
        compiler_params=pltpu.CompilerParams(
            dimension_semantics=("parallel",),
            vmem_limit_bytes=_vmem_limit_bytes(tile_rows, dim, x.dtype, x.dtype),
        ),
        # Only alias when the caller no longer needs x (pre-norm residual
        # layouts usually keep x alive, so this is opt-in).
        input_output_aliases=({0: 0} if donate_input else {}),
    )(x2d, w2d)

    return out2d.reshape(orig_shape)


def rmsnorm_ref(x, weight, eps=1e-6):
    xf = x.astype(jnp.float32)
    inv = jax.lax.rsqrt(jnp.mean(xf * xf, axis=-1, keepdims=True) + eps)
    return (xf * inv * weight.astype(jnp.float32)).astype(x.dtype)


if __name__ == "__main__":
    # Small shapes consistent with the Transformer module (dim kept a multiple
    # of 128 for lane-dense stores; Transformer uses ModelArgs.norm_eps = 1e-5).
    batch, seq, dim = 2, 64, 256
    eps = 1e-5
    key = jax.random.PRNGKey(0)
    kx, kw = jax.random.split(key)

    x = jax.random.normal(kx, (batch, seq, dim), dtype=jnp.float32)
    weight_init = jnp.ones((dim,), dtype=jnp.float32)    # nn.Parameter(torch.ones(dim))
    weight_rand = 1.0 + 0.1 * jax.random.normal(kw, (dim,), dtype=jnp.float32)

    # 1) Module exactly as initialized (weight = ones).
    out = jax.block_until_ready(rmsnorm(x, weight_init, eps=eps))
    ref = rmsnorm_ref(x, weight_init, eps=eps)
    assert out.shape == x.shape and out.dtype == x.dtype
    assert jnp.allclose(out, ref, atol=1e-5, rtol=1e-5)

    # 2) Non-trivial (trained-like) weight.
    out = jax.block_until_ready(rmsnorm(x, weight_rand, eps=eps))
    ref = rmsnorm_ref(x, weight_rand, eps=eps)
    assert jnp.allclose(out, ref, atol=1e-5, rtol=1e-5)

    # 3) bf16 activations (exercises the 16-row sublane-pack tile path).
    xb = x.astype(jnp.bfloat16)
    outb = jax.block_until_ready(rmsnorm(xb, weight_rand, eps=eps))
    refb = rmsnorm_ref(xb, weight_rand, eps=eps)
    assert outb.shape == xb.shape and outb.dtype == jnp.bfloat16
    assert jnp.allclose(outb.astype(jnp.float32), refb.astype(jnp.float32),
                        atol=2e-2, rtol=2e-2)

    print("KERNEL_OK")
</pallas_src>

<mosaic_0001>
module attributes {stable_mosaic.version = 11 : i64} {
  func.func @_rmsnorm_kernel(%arg0: i32, %arg1: memref<64x256xf32, #tpu.memory_space<vmem>>, %arg2: memref<1x256xf32, #tpu.memory_space<vmem>>, %arg3: memref<64x256xf32, #tpu.memory_space<vmem>>) attributes {dimension_semantics = [#tpu.dimension_semantics<parallel>], iteration_bounds = array<i64: 2>, scalar_prefetch = 0 : i64, scratch_operands = 0 : i64, tpu.core_type = #tpu.core_type<tc>, window_params = [{transform_indices = @transform_0, window_bounds = array<i64: 64, 256>}, {pipeline_mode = #tpu.pipeline_mode<synchronous>, transform_indices = @transform_1, window_bounds = array<i64: 1, 256>}, {transform_indices = @transform_2, window_bounds = array<i64: 64, 256>}]} {
    %c0 = arith.constant 0 : index
    %c0_0 = arith.constant 0 : index
    %0 = vector.load %arg1[%c0, %c0_0] : memref<64x256xf32, #tpu.memory_space<vmem>>, vector<64x256xf32>
    %c0_1 = arith.constant 0 : index
    %c0_2 = arith.constant 0 : index
    %1 = vector.load %arg2[%c0_1, %c0_2] : memref<1x256xf32, #tpu.memory_space<vmem>>, vector<1x256xf32>
    %2 = arith.mulf %0, %0 : vector<64x256xf32>
    %cst = arith.constant dense<0.000000e+00> : vector<64xf32>
    %3 = vector.multi_reduction <add>, %2, %cst [1] : vector<64x256xf32> to vector<64xf32>
    %4 = vector.shape_cast %3 : vector<64xf32> to vector<64x1xf32>
    %cst_3 = arith.constant 2.560000e+02 : f32
    %5 = vector.broadcast %cst_3 : f32 to vector<64x1xf32>
    %6 = arith.divf %4, %5 : vector<64x1xf32>
    %cst_4 = arith.constant 9.99999974E-6 : f32
    %7 = vector.broadcast %cst_4 : f32 to vector<64x1xf32>
    %8 = arith.addf %6, %7 : vector<64x1xf32>
    %9 = math.rsqrt %8 : vector<64x1xf32>
    %10 = vector.broadcast %9 : vector<64x1xf32> to vector<64x256xf32>
    %11 = arith.mulf %0, %10 : vector<64x256xf32>
    %12 = vector.broadcast %1 : vector<1x256xf32> to vector<64x256xf32>
    %13 = arith.mulf %11, %12 : vector<64x256xf32>
    %c0_5 = arith.constant 0 : index
    %c0_6 = arith.constant 0 : index
    %14 = vector.load %arg3[%c0_5, %c0_6] : memref<64x256xf32, #tpu.memory_space<vmem>>, vector<64x256xf32>
    tpu.vector_store %arg3[%c0_5, %c0_6], %13 {strides = array<i32>} : memref<64x256xf32, #tpu.memory_space<vmem>>, vector<64x256xf32>,
    return
  }
  func.func @transform_0(%arg0: i32) -> (i32, i32) {
    %c0_i32 = arith.constant 0 : i32
    %c0_i32_0 = arith.constant 0 : i32
    return %arg0, %c0_i32 : i32, i32
  }
  func.func @transform_1(%arg0: i32) -> (i32, i32) {
    %c0_i32 = arith.constant 0 : i32
    %c0_i32_0 = arith.constant 0 : i32
    %c0_i32_1 = arith.constant 0 : i32
    return %c0_i32, %c0_i32_0 : i32, i32
  }
  func.func @transform_2(%arg0: i32) -> (i32, i32) {
    %c0_i32 = arith.constant 0 : i32
    %c0_i32_0 = arith.constant 0 : i32
    return %arg0, %c0_i32 : i32, i32
  }
}

</mosaic_0001>

<bundles_post_ra>
// kernel: tpu_custom_call.1
= control target key start
LH: loop header
LB: loop body
LE: loop exit
PB: predicated region body
PF: predicated region fallthrough
CT: control target
= control target key end

     0   :  { %7 = vsyncpa [#allocation3], 0  ;;  %s1075_s0 = inlined_call_operand.hbm [shape: f32[128,256], index: 0, kind: input, shape index: {}]   ;;  %s1076_s1 = inlined_call_operand.hbm [shape: f32[1,256], index: 1, kind: input, shape index: {}]   ;;  %s1077_s2 = inlined_call_operand.hbm [shape: f32[128,256], index: 2, kind: output, shape index: {}]  }
   0x1   :  { %9 = vsyncpa [#allocation3 + $0x1], 0 }
   0x2   :  { %10 = vsyncpa [#allocation6], 0 }
   0x3   :  { %11 = vsyncpa [#allocation4], 0 }
   0x4   :  { %13 = vsyncpa [#allocation4 + $0x1], 0  ;;  %s750_s9 = smov 0   ;;  %s752_s10 = smov 0  }
   0x5   :  { %s754_s11 = smov 0   ;;  %s756_s12 = smov 0  }
   0x6 LB: > { %s771_s13 = sadd.s32 4294967295, %s727_s12   ;;  %s495_s14 = sadd.s32 4294967294, %s727_s12   ;;  %s727_s12 = sphi %s756_s12, %s1088_s12   ;;  %s723_s11 = sphi %s754_s11, %s1087_s11   ;;  %s719_s10 = sphi %s752_s10, %s1086_s10   ;;  %s715_s9 = sphi %s750_s9, %s1085_s9  }
   0x7   : > { %s775_s15 = sadd.s32 1, %s727_s12   ;;  %s26_s16 = sadd.s32 1, %s723_s11 }
   0x8   : > { %s23_s17 = ssub.s32 %s727_s12, %s775_s15  ;;  %p33_p0 = scmp.ne.s32.totalorder %s723_s11, %s719_s10 }
   0x9   : > { %p24_p1 = scmp.eq.s32.totalorder %s23_s17, 0  ;;  %p34_p2 = scmp.eq.s32.totalorder %s727_s12, 0 }
   0xa   : > { %p39_p3 = scmp.ne.s32.totalorder %s719_s10, %s715_s9  ;;  %p40_p4 = scmp.eq.s32.totalorder %s771_s13, 0 }
   0xb   : > { %s787_s18 = scalar_select %p24_p1, %s723_s11, %s26_s16  }
   0xc   : > { %p789_p5 = por %p34_p2, %p33_p0  ;;  %p795_p6 = por %p40_p4, %p39_p3 }
   0xd   : > { %p84_p7 = scmp.eq.s32.totalorder %s771_s13, 1  ;;  %p90_p8 = scmp.eq.s32.totalorder %s495_s14, 1 }
   0xe   : > { %p496_p9 = scmp.ge.s32.totalorder %s727_s12, 1  ;;  %p97_p10 = scmp.lt.s32.totalorder %s727_s12, 3 }
   0xf   : > { %p802_p11 = por %p84_p7, %p33_p0  ;;  %p806_p12 = por %p90_p8, %p39_p3 }
  0x10   : > { %p810_p13 = pnand %p496_p9, %p97_p10  ;;  %s109_s26 = sshll.u32 %s1076_s1, 4  ;;  %s110_s26 = int_to_ptr.hbm [resolvable:$true] %s109_s26 }
  0x11   : > { %s729_s27 = smov [#allocation5]   ;;  %p538_p3 = scmp.lt.s32.totalorder %s727_s12, 2 }
  0x12   : > { %p525_p1 = pneg %p810_p13  ;;  %s111_s28 = sshll.u32 %s729_s27, 4  ;;  %s112_s28 = int_to_ptr.vmem [resolvable:$true] %s111_s28 }
  0x13   : > { %s122_s29 = sand.u32 1, %s723_s11   ;;  %p826_p7 = pnand %p538_p3, %p789_p5 }
  0x14   : > { %p526_p2 = pnand %p525_p1, %p40_p4  ;;  %s499_s3 = sshll.u32 %s122_s29, 7 }
  0x15   : > { %s514_s4 = sshll.u32 %s727_s12, 7  ;;  %s126_s14 = scalar_lea.vmem [#allocation2], %s499_s3 }
  0x16   : > { %528 = dma.hbm_to_vmem [thread:$0]  (!%p526_p2), %s110_s26, 32, %s112_s28, [#allocation6]  }
  0x17   : > { %s132_s7 = scalar_lea.hbm %s1075_s0, %s514_s4  ;;  %s135_s16 = sshll.u32 %s126_s14, 4  ;;  %s136_s16 = int_to_ptr.vmem [resolvable:$true] %s135_s16 }
  0x18   : > { %s133_s8 = sshll.u32 %s132_s7, 4  ;;  %s123_s17 = scalar_lea.sflag [#allocation3], %s122_s29  ;;  %s134_s8 = int_to_ptr.hbm [resolvable:$true] %s133_s8 }
  0x19   : > { %s627_s24 = sshra.s32 %s134_s8, 4  ;;  %p631_p8 = pneg %p826_p7  ;;  %s628_s24 = int_to_ptr.hbm [resolvable:$true] %s627_s24 }
  0x1a   : > { %s629_s19 = scalar_lea.hbm %s628_s24, 128  ;;  %s634_s27 = scalar_lea.hbm %s1075_s0, 256 }
  0x1b   : > { %p630_p5 = scmp.ne.s32.totalorder %s628_s24, %s629_s19  ;;  %p635_p1 = scmp.lt.s32.totalorder %s628_s24, %s1075_s0 }
  0x1c   : > { %p636_p2 = scmp.lt.s32.totalorder %s634_s27, %s629_s19 }
  0x1d   : > { %p632_p9 = pnand %p631_p8, %p630_p5 }
  0x1e   : > { %p637_p3 = por %p636_p2, %p635_p1 }
  0x1f   : > { %p633_p10 = pneg %p632_p9 }
  0x21   : > { %p638_p0 = pnand %p637_p3, %p633_p10 }
  0x23   : > { %641 = shalt.err (!%p638_p0)
}
  0x24   : > { %s730_s29 = smov 256   ;;  %s731_s3 = smov 16  }
  0x25   : > { %532 = dma.hbm_to_vmem [thread:$0]  (!%p826_p7), %s134_s8, 2048, %s136_s16, %s123_s17, %s730_s29, %s730_s29, %s731_s3  }
  0x26   : > { %147 = sbr.rel (%p810_p13) target bundleno = 223 (0xdf), region = 28  ;;  %s847_s5 = sand.u32 (!%p810_p13), 1, %s719_s10  }
  0x27   : > { %s504_s6 = sshll.u32 (!%p810_p13), %s847_s5, 7  ;;  %s150_s7 = scalar_lea.sflag (!%p810_p13), [#allocation3], %s847_s5 }
  0x28   : > { %s853_s14 = scalar_lea.vmem (!%p810_p13), [#allocation2], %s504_s6 }
  0x2b   : > { %702 = dma.done.wait (%p795_p6), %s150_s7, 2048  }
  0x2c   : > { %704 = vsyncadd (%p795_p6), %s150_s7, 4294965248 }
  0x2d   : > { %706 = dma.done.wait (%p40_p4), [#allocation6], 32  }
  0x2e   : > { %708 = vsyncadd (%p40_p4), [#allocation6], 4294967264  ;;  %v864_v0 = vld [vmem:[%s853_s14 + $0x40] sm:$0xff]  ;;  %v867_v1 = vld [vmem:[%s853_s14 + $0x48] sm:$0xff]  ;;  %v732_v40 = vmov 256.0   ;;  %s988_s20 = scalar_lea.vmem [#allocation7], %s504_s6 }
  0x2f   : > { %v870_v2 = vld [vmem:[%s853_s14 + $0x20] sm:$0xff]  ;;  %v207_v3 = vmul.f32 %v864_v0, %v864_v0  ;;  %v208_v4 = vmul.f32 %v867_v1, %v867_v1  ;;  %v877_v5 = vld [vmem:[%s853_s14 + $0x28] sm:$0xff]  ;;  %v894_v12 = vld [vmem:[%s853_s14 + $0x50] sm:$0xff]  ;;  %579 = vrcp.f32 %v732_v40  ;;  %s516_s23 = sshll.u32 %s771_s13, 7  ;;  %s409_s13 = sshll.u32 %s988_s20, 4  ;;  %s410_s13 = int_to_ptr.vmem [resolvable:$true] %s409_s13 }
  0x30   : > { %v203_v6 = vmul.f32 %v870_v2, %v870_v2  ;;  %v882_v7 = vld [vmem:[%s853_s14] sm:$0xff]  ;;  %v885_v8 = vld [vmem:[%s853_s14 + $0x8] sm:$0xff]  ;;  %v204_v9 = vmul.f32 %v877_v5, %v877_v5  ;;  %v897_v13 = vld [vmem:[%s853_s14 + $0x58] sm:$0xff]  ;;  %v209_v21 = vmul.f32 %v894_v12, %v894_v12  ;;  %s408_s16 = scalar_lea.hbm %s1077_s2, %s516_s23  ;;  %s396_s24 = scalar_lea.sflag [#allocation4], %s847_s5 }
  0x31   : > { %v199_v10 = vmul.f32 %v882_v7, %v882_v7  ;;  %v200_v11 = vmul.f32 %v885_v8, %v885_v8  ;;  %v900_v14 = vld [vmem:[%s853_s14 + $0x30] sm:$0xff]  ;;  %v227_v15 = vadd.f32 %v208_v4, %v207_v3  ;;  %v903_v16 = vld [vmem:[%s853_s14 + $0x38] sm:$0xff]  ;;  %v210_v22 = vmul.f32 %v897_v13, %v897_v13  ;;  %v930_v32 = vld [vmem:[%s853_s14 + $0x60] sm:$0xff]  ;;  %s411_s17 = sshll.u32 %s408_s16, 4  ;;  %s677_s28 = scalar_lea.hbm %s1077_s2, 256  ;;  %s412_s17 = int_to_ptr.hbm [resolvable:$true] %s411_s17 }
  0x32   : > { %v906_v17 = vld [vmem:[%s853_s14 + $0x10] sm:$0xff]  ;;  %v909_v18 = vld [vmem:[%s853_s14 + $0x18] sm:$0xff]  ;;  %v221_v19 = vadd.f32 %v204_v9, %v203_v6  ;;  %v205_v23 = vmul.f32 %v900_v14, %v900_v14  ;;  %v206_v24 = vmul.f32 %v903_v16, %v903_v16  ;;  %v933_v33 = vld [vmem:[%s853_s14 + $0x68] sm:$0xff]  ;;  %v211_v36 = vmul.f32 %v930_v32, %v930_v32  ;;  %s671_s19 = sshra.s32 %s412_s17, 4  ;;  %s672_s19 = int_to_ptr.hbm [resolvable:$true] %s671_s19 }
  0x33   : > { %v215_v20 = vadd.f32 %v200_v11, %v199_v10  ;;  %228 = vadd.xlane.f32.xlu2 %v227_v15  ;;  %v201_v25 = vmul.f32 %v906_v17, %v906_v17  ;;  %v202_v26 = vmul.f32 %v909_v18, %v909_v18  ;;  %v230_v27 = vadd.f32 %v210_v22, %v209_v21  ;;  %v924_v30 = vld [vmem:[%s853_s14 + $0x70] sm:$0xff]  ;;  %v927_v31 = vld [vmem:[%s853_s14 + $0x78] sm:$0xff]  ;;  %v198_v11 = vld [vmem:[#allocation5] sm:$0x3]  ;;  %s673_s25 = scalar_lea.hbm %s672_s19, 128  ;;  %p678_p0 = scmp.lt.s32.totalorder %s672_s19, %s1077_s2 }
  0x34   : > { %222 = vadd.xlane.f32.xlu1 %v221_v19  ;;  %v224_v28 = vadd.f32 %v206_v24, %v205_v23  ;;  %v213_v34 = vmul.f32 %v924_v30, %v924_v30  ;;  %v214_v35 = vmul.f32 %v927_v31, %v927_v31  ;;  %v212_v37 = vmul.f32 %v933_v33, %v933_v33  ;;  %p674_p4 = scmp.ne.s32.totalorder %s672_s19, %s673_s25  ;;  %p679_p7 = scmp.lt.s32.totalorder %s677_s28, %s673_s25 }
  0x35   : > { %216 = vadd.xlane.f32.xlu0 %v215_v20  ;;  %v218_v29 = vadd.f32 %v202_v26, %v201_v25  ;;  %v580_v41 = vpop.eup %579  ;;  %v956_v22 = vperm.slane %v198_v11, 0  ;;  %v958_v23 = vperm.slane %v198_v11, 1 }
  0x36   : > { %v236_v38 = vadd.f32 %v214_v35, %v213_v34  ;;  %v233_v39 = vadd.f32 %v212_v37, %v211_v36  ;;  %v240_v42 = vmul.f32 256.0, %v580_v41  ;;  %vm244_vm0 = vweird.f32 %v580_v41  ;;  %p675_p6 = pnand %p674_p4, %p802_p11  ;;  %p680_p5 = por %p679_p7, %p678_p0 }
  0x38   : > { %v241_v43 = vsub.f32 1.0, %v240_v42  ;;  %p676_p13 = pneg %p675_p6 }
  0x3a   : > { %v242_v44 = vmul.f32 %v580_v41, %v241_v43  ;;  %p681_p8 = pnand %p680_p5, %p676_p13 }
  0x3b   : > { %231 = vadd.xlane.f32.xlu2 %v230_v27 }
  0x3c   : > { %225 = vadd.xlane.f32.xlu1 %v224_v28  ;;  %v243_v45 = vadd.f32 %v580_v41, %v242_v44 }
  0x3d   : > { %219 = vadd.xlane.f32.xlu0 %v218_v29 }
  0x3e   : > { %v245_v46 = vsel %vm244_vm0, %v580_v41, %v243_v45 }
  0x44   : > { %237 = vadd.xlane.f32.xlu1 %v236_v38 }
  0x45   : > { %234 = vadd.xlane.f32.xlu0 %v233_v39 }
  0xa6   : > { %v229_v47 = vpop.xlane.xlu2 %228 }
  0xa7   : > { %v250_v48 = vmul.f32 %v245_v46, %v229_v47  ;;  %v223_v49 = vpop.xlane.xlu1 %222 }
  0xa8   : > { %v217_v50 = vpop.xlane.xlu0 %216  ;;  %v248_v51 = vmul.f32 %v245_v46, %v223_v49 }
  0xa9   : > { %v246_v52 = vmul.f32 %v245_v46, %v217_v50  ;;  %v258_v53 = vadd.f32 1e-05, %v250_v48 }
  0xaa   : > { %v256_v54 = vadd.f32 1e-05, %v248_v51 }
  0xab   : > { %v943_v55 = vadd.f32 1e-05, %v246_v52  ;;  %581 = vrsqrt.f32 %v258_v53  ;;  %vm308_vm1 = vweird.f32 %v258_v53 }
  0xac   : > { %583 = vrsqrt.f32 %v256_v54  ;;  %vm288_vm2 = vweird.f32 %v256_v54 }
  0xad   : > { %585 = vrsqrt.f32 %v943_v55  ;;  %vm268_vm3 = vweird.f32 %v943_v55 }
  0xae   : > { %v232_v56 = vpop.xlane.xlu2 %231 }
  0xaf   : > { %v251_v57 = vmul.f32 %v245_v46, %v232_v56  ;;  %v226_v58 = vpop.xlane.xlu1 %225 }
  0xb0   : > { %v220_v59 = vpop.xlane.xlu0 %219  ;;  %v249_v60 = vmul.f32 %v245_v46, %v226_v58 }
  0xb1   : > { %v247_v61 = vmul.f32 %v245_v46, %v220_v59  ;;  %v582_v62 = vpop.eup %581  ;;  %v946_v63 = vadd.f32 1e-05, %v251_v57 }
  0xb2   : > { %v584_v3 = vpop.eup %583  ;;  %v303_v4 = vmul.f32 %v582_v62, %v258_v53  ;;  %v948_v6 = vadd.f32 1e-05, %v249_v60  ;;  %vm309_vm4 = vweird.f32 %v582_v62 }
  0xb3   : > { %v950_v9 = vadd.f32 1e-05, %v247_v61  ;;  %v586_v10 = vpop.eup %585  ;;  %v283_v15 = vmul.f32 %v584_v3, %v256_v54  ;;  %587 = vrsqrt.f32 %v946_v63  ;;  %vm289_vm5 = vweird.f32 %v584_v3  ;;  %vm310_vm8 = vmor %vm308_vm1, %vm309_vm4 }
  0xb4   : > { %v304_v19 = vmul.f32 %v582_v62, %v303_v4  ;;  %v263_v20 = vmul.f32 %v586_v10, %v943_v55  ;;  %589 = vrsqrt.f32 %v948_v6  ;;  %vm269_vm6 = vweird.f32 %v586_v10  ;;  %vm290_vm10 = vmor %vm288_vm2, %vm289_vm5 }
  0xb5   : > { %v284_v21 = vmul.f32 %v584_v3, %v283_v15  ;;  %591 = vrsqrt.f32 %v950_v9  ;;  %vm318_vm7 = vweird.f32 %v946_v63  ;;  %vm270_vm11 = vmor %vm268_vm3, %vm269_vm6  ;;  %vm298_vm14 = vweird.f32 %v948_v6 }
  0xb6   : > { %v305_v24 = vmul.f32 0.5, %v304_v19  ;;  %v264_v25 = vmul.f32 %v586_v10, %v263_v20  ;;  %vm278_vm1 = vweird.f32 %v950_v9 }
  0xb7   : > { %v285_v26 = vmul.f32 0.5, %v284_v21  ;;  %v238_v27 = vpop.xlane.xlu1 %237 }
  0xb8   : > { %v235_v28 = vpop.xlane.xlu0 %234  ;;  %v306_v29 = vsub.f32 1.5, %v305_v24  ;;  %v265_v34 = vmul.f32 0.5, %v264_v25  ;;  %v253_v35 = vmul.f32 %v245_v46, %v238_v27 }
  0xb9   : > { %v588_v36 = vpop.eup %587  ;;  %v286_v37 = vsub.f32 1.5, %v285_v26  ;;  %v252_v42 = vmul.f32 %v245_v46, %v235_v28 }
  0xba   : > { %v590_v38 = vpop.eup %589  ;;  %v307_v39 = vmul.f32 %v582_v62, %v306_v29  ;;  %v266_v40 = vsub.f32 1.5, %v265_v34  ;;  %v313_v41 = vmul.f32 %v588_v36, %v946_v63  ;;  %vm319_vm9 = vweird.f32 %v588_v36 }
  0xbb   : > { %v963_v43 = vpop.eup %591  ;;  %v287_v44 = vmul.f32 %v584_v3, %v286_v37  ;;  %v293_v45 = vmul.f32 %v590_v38, %v948_v6  ;;  %v967_v47 = vadd.f32 1e-05, %v253_v35  ;;  %vm299_vm12 = vweird.f32 %v590_v38  ;;  %vm320_vm13 = vmor %vm318_vm7, %vm319_vm9 }
  0xbc   : > { %v311_v48 = vsel %vm310_vm8, %v582_v62, %v307_v39  ;;  %v267_v49 = vmul.f32 %v586_v10, %v266_v40  ;;  %v314_v50 = vmul.f32 %v588_v36, %v313_v41  ;;  %v273_v51 = vmul.f32 %v963_v43, %v950_v9  ;;  %vm300_vm15 = vmor %vm298_vm14, %vm299_vm12 }
  0xbd   : > { %v350_v46 = vmul.f32 %v311_v48, %v864_v0  ;;  %v351_v52 = vmul.f32 %v311_v48, %v867_v1  ;;  %v291_v53 = vsel %vm290_vm10, %v584_v3, %v287_v44  ;;  %v294_v56 = vmul.f32 %v590_v38, %v293_v45 }
  0xbe   : > { %v346_v57 = vmul.f32 %v291_v53, %v870_v2  ;;  %v347_v54 = vmul.f32 %v291_v53, %v877_v5  ;;  %v271_v58 = vsel %vm270_vm11, %v586_v10, %v267_v49  ;;  %v315_v59 = vmul.f32 0.5, %v314_v50 }
  0xbf   : > { %v371_v60 = vmul.f32 %v956_v22, %v350_v46  ;;  %v372_v61 = vmul.f32 %v958_v23, %v351_v52  ;;  %v342_v0 = vmul.f32 %v271_v58, %v882_v7  ;;  %v343_v1 = vmul.f32 %v271_v58, %v885_v8 }
  0xc0   : > { %v367_v62 = vmul.f32 %v956_v22, %v346_v57  ;;  %v368_v55 = vmul.f32 %v958_v23, %v347_v54  ;;  %v316_v3 = vsub.f32 1.5, %v315_v59  ;;  %v295_v4 = vmul.f32 0.5, %v294_v56 }
  0xc1   : > { %387 = vst [vmem:[%s988_s20 + $0x40] sm:$0xff] %v371_v60  ;;  %v363_v2 = vmul.f32 %v956_v22, %v342_v0  ;;  %v274_v5 = vmul.f32 %v963_v43, %v273_v51  ;;  %v364_v7 = vmul.f32 %v958_v23, %v343_v1  ;;  %593 = vrsqrt.f32 %v967_v47 }
  0xc2   : > { %388 = vst [vmem:[%s988_s20 + $0x48] sm:$0xff] %v372_v61  ;;  %v317_v8 = vmul.f32 %v588_v36, %v316_v3  ;;  %v296_v10 = vsub.f32 1.5, %v295_v4  ;;  %v260_v15 = vadd.f32 1e-05, %v252_v42  ;;  %vm279_vm0 = vweird.f32 %v963_v43 }
  0xc3   : > { %383 = vst [vmem:[%s988_s20 + $0x20] sm:$0xff] %v367_v62  ;;  %v275_v11 = vmul.f32 0.5, %v274_v5  ;;  %vm280_vm2 = vmor %vm278_vm1, %vm279_vm0  ;;  %vm338_vm4 = vweird.f32 %v967_v47 }
  0xc4   : > { %384 = vst [vmem:[%s988_s20 + $0x28] sm:$0xff] %v368_v55  ;;  %v321_v19 = vsel %vm320_vm13, %v588_v36, %v317_v8  ;;  %v297_v20 = vmul.f32 %v590_v38, %v296_v10  ;;  %595 = vrsqrt.f32 %v260_v15  ;;  %vm328_vm7 = vweird.f32 %v260_v15 }
  0xc5   : > { %379 = vst [vmem:[%s988_s20] sm:$0xff] %v363_v2  ;;  %v352_v21 = vmul.f32 %v321_v19, %v894_v12  ;;  %v353_v24 = vmul.f32 %v321_v19, %v897_v13  ;;  %v276_v25 = vsub.f32 1.5, %v275_v11 }
  0xc6   : > { %380 = vst [vmem:[%s988_s20 + $0x8] sm:$0xff] %v364_v7  ;;  %v301_v63 = vsel %vm300_vm15, %v590_v38, %v297_v20 }
  0xc7   : > { %v373_v26 = vmul.f32 %v956_v22, %v352_v21  ;;  %v374_v6 = vmul.f32 %v958_v23, %v353_v24  ;;  %v348_v27 = vmul.f32 %v301_v63, %v900_v14  ;;  %v349_v12 = vmul.f32 %v301_v63, %v903_v16  ;;  %v594_v13 = vpop.eup %593 }
  0xc8   : > { %v277_v28 = vmul.f32 %v963_v43, %v276_v25  ;;  %v333_v35 = vmul.f32 %v594_v13, %v967_v47  ;;  %vm339_vm3 = vweird.f32 %v594_v13 }
  0xc9   : > { %389 = vst [vmem:[%s988_s20 + $0x50] sm:$0xff] %v373_v26  ;;  %v369_v29 = vmul.f32 %v956_v22, %v348_v27  ;;  %v370_v34 = vmul.f32 %v958_v23, %v349_v12  ;;  %vm340_vm5 = vmor %vm338_vm4, %vm339_vm3 }
  0xca   : > { %390 = vst [vmem:[%s988_s20 + $0x58] sm:$0xff] %v374_v6  ;;  %v281_v14 = vsel %vm280_vm2, %v963_v43, %v277_v28  ;;  %v596_v16 = vpop.eup %595  ;;  %v334_v37 = vmul.f32 %v594_v13, %v333_v35 }
  0xcb   : > { %385 = vst [vmem:[%s988_s20 + $0x30] sm:$0xff] %v369_v29  ;;  %v344_v36 = vmul.f32 %v281_v14, %v906_v17  ;;  %v345_v9 = vmul.f32 %v281_v14, %v909_v18  ;;  %v323_v38 = vmul.f32 %v596_v16, %v260_v15  ;;  %vm329_vm6 = vweird.f32 %v596_v16 }
  0xcc   : > { %386 = vst [vmem:[%s988_s20 + $0x38] sm:$0xff] %v370_v34  ;;  %v335_v41 = vmul.f32 0.5, %v334_v37  ;;  %vm330_vm8 = vmor %vm328_vm7, %vm329_vm6 }
  0xcd   : > { %v365_v39 = vmul.f32 %v956_v22, %v344_v36  ;;  %v366_v40 = vmul.f32 %v958_v23, %v345_v9  ;;  %v324_v42 = vmul.f32 %v596_v16, %v323_v38 }
  0xce   : > { %v336_v44 = vsub.f32 1.5, %v335_v41 }
  0xcf   : > { %381 = vst [vmem:[%s988_s20 + $0x10] sm:$0xff] %v365_v39  ;;  %v325_v43 = vmul.f32 0.5, %v324_v42 }
  0xd0   : > { %382 = vst [vmem:[%s988_s20 + $0x18] sm:$0xff] %v366_v40  ;;  %v337_v45 = vmul.f32 %v594_v13, %v336_v44 }
  0xd1   : > { %v326_v17 = vsub.f32 1.5, %v325_v43 }
  0xd2   : > { %v341_v18 = vsel %vm340_vm5, %v594_v13, %v337_v45 }
  0xd3   : > { %v356_v48 = vmul.f32 %v341_v18, %v924_v30  ;;  %v357_v49 = vmul.f32 %v341_v18, %v927_v31  ;;  %v327_v50 = vmul.f32 %v596_v16, %v326_v17 }
  0xd5   : > { %v377_v47 = vmul.f32 %v956_v22, %v356_v48  ;;  %v378_v51 = vmul.f32 %v958_v23, %v357_v49  ;;  %v331_v46 = vsel %vm330_vm8, %v596_v16, %v327_v50 }
  0xd6   : > { %v354_v52 = vmul.f32 %v331_v46, %v930_v32  ;;  %v355_v30 = vmul.f32 %v331_v46, %v933_v33 }
  0xd7   : > { %393 = vst [vmem:[%s988_s20 + $0x70] sm:$0xff] %v377_v47 }
  0xd8   : > { %394 = vst [vmem:[%s988_s20 + $0x78] sm:$0xff] %v378_v51  ;;  %v375_v31 = vmul.f32 %v956_v22, %v354_v52  ;;  %v376_v53 = vmul.f32 %v958_v23, %v355_v30 }
  0xda   : > { %391 = vst [vmem:[%s988_s20 + $0x60] sm:$0xff] %v375_v31 }
  0xdb   : > { %392 = vst [vmem:[%s988_s20 + $0x68] sm:$0xff] %v376_v53 }
  0xdc   : > { %684 = shalt.err (!%p681_p8)
}
  0xdd   : > { %s733_s3 = smov 256   ;;  %s734_s5 = smov 16  }
  0xde   : > { %523 = dma.vmem_to_hbm [thread:$0]  (%p802_p11), %s410_s13, 2048, %s412_s17, %s396_s24, %s733_s3, %s733_s3, %s734_s5  }
  0xdf PF: > { %s426_s6 = sand.u32 1, %s715_s9   ;;  %p1084_p9 = scmp.ge.s32.totalorder %s727_s12, 2 }
  0xe0   : > { %s427_s7 = scalar_lea.sflag [#allocation4], %s426_s6 }
  0xe1   : > { %p534_p10 = pnand %p1084_p9, %p806_p12 }
  0xe3   : > { %p535_p1 = pneg %p534_p10 }
  0xe5   : > { %710 = dma.done.wait (%p535_p1), %s427_s7, 2048  }
  0xe6   : > { %712 = vsyncadd (%p535_p1), %s427_s7, 4294965248  ;;  %p16_p2 = scmp.ge.s32.totalorder %s775_s15, 4   ;;  %s1085_s9 = smov %s719_s10 }
  0xe7   : > { %s1086_s10 = smov %s723_s11  ;;  %s1087_s11 = smov %s787_s18 }
  0xe8   : > { %s1088_s12 = smov %s775_s15  ;;  %18 = sbr.rel (!%p16_p2) target bundleno = 6 (0x6), region = 77 }
  0xed   :  { %433 = vsyncpa [#allocation3], 1 }
  0xee   :  { %435 = vsyncpa [#allocation3 + $0x1], 1 }
  0xef   :  { %436 = vsyncpa [#allocation6], 1 }
  0xf0   :  { %437 = vsyncpa [#allocation4], 1 }
  0xf1   :  { %439 = vsyncpa [#allocation4 + $0x1], 1 }

</bundles_post_ra>
